<compile_context>
chip_gen: v6e
topology: v6e:2x2x1
jax: 0.10.0
libtpu: 0.0.40
codegen_flags: <defaults>
</compile_context>

<pallas_src>
import jax
import jax.numpy as jnp
from jax.experimental import pallas as pl
from jax.experimental.pallas import tpu as pltpu

LANES = 128  # vreg lane width; hidden and head dims are padded to this.


def _round_up(n, m):
    return ((n + m - 1) // m) * m


def _make_kernel(out_dim):
    """Kernel factory; out_dim is static (closed over)."""

    def kernel(slopes_ref, x_ref, w1_ref, b1_ref, w2_ref, b2_ref,
               wh_ref, bh_ref, out_ref):
        x = x_ref[...]                       # (TB, in_dim)
        a1 = slopes_ref[0]                   # PReLU slope, layer 1 (SMEM scalar)
        a2 = slopes_ref[1]                   # PReLU slope, layer 2

        # layer1: Linear + PReLU  (padded hidden lanes stay exactly 0)
        h1 = jnp.dot(x, w1_ref[...], preferred_element_type=jnp.float32) + b1_ref[...]
        h1 = jnp.where(h1 >= 0, h1, a1 * h1)

        # layer2: Linear + PReLU
        h2 = jnp.dot(h1, w2_ref[...], preferred_element_type=jnp.float32) + b2_ref[...]
        h2 = jnp.where(h2 >= 0, h2, a2 * h2)

        # fused heads: lanes [0, out_dim) = action logits, lane out_dim = value
        head = jnp.dot(h2, wh_ref[...], preferred_element_type=jnp.float32) + bh_ref[...]

        lane = jax.lax.broadcasted_iota(jnp.int32, head.shape, 1)
        is_action = lane < out_dim

        # numerically stable softmax over the action lanes only
        masked_logits = jnp.where(is_action, head, -jnp.inf)
        m = jnp.max(masked_logits, axis=-1, keepdims=True)
        e = jnp.where(is_action, jnp.exp(head - m), 0.0)
        inv_denom = pl.reciprocal(jnp.sum(e, axis=-1, keepdims=True), approx=False)
        probs = e * inv_denom                # zero on padded / value lanes

        # single unmasked lane-dense store: probs | value | zeros
        out_ref[...] = jnp.where(lane == out_dim, head, probs)

    return kernel


def pack_params(params, lanes=LANES):
    """Pad hidden dim to `lanes` and fuse the two heads into one weight (once)."""
    in_dim, hidden = params["w1"].shape
    out_dim = params["wa"].shape[1]
    assert hidden <= lanes and out_dim + 1 <= lanes

    def pad2(a, rows, cols):
        return jnp.pad(a, ((0, rows - a.shape[0]), (0, cols - a.shape[1])))

    w1 = pad2(params["w1"], in_dim, lanes)           # (in_dim, 128)
    b1 = pad2(params["b1"], 1, lanes)                # (1, 128)
    w2 = pad2(params["w2"], lanes, lanes)            # (128, 128)
    b2 = pad2(params["b2"], 1, lanes)                # (1, 128)
    wh = jnp.concatenate([params["wa"], params["wv"]], axis=1)   # (hidden, out_dim+1)
    bh = jnp.concatenate([params["ba"], params["bv"]], axis=1)   # (1, out_dim+1)
    wh = pad2(wh, lanes, lanes)                      # (128, 128)
    bh = pad2(bh, 1, lanes)                          # (1, 128)
    slopes = jnp.stack([params["a1"][0], params["a2"][0]]).astype(jnp.float32)  # (2,)
    return {"w1": w1, "b1": b1, "w2": w2, "b2": b2, "wh": wh, "bh": bh,
            "slopes": slopes, "out_dim": out_dim}


def vanilla_pg_forward(x, packed, *, block_b=512):
    """Full VanillaPG forward pass in a single batch-tiled Pallas kernel.

    Returns (probs, value): probs (B, out_dim) Categorical probabilities,
    value (B, 1).
    """
    B, in_dim = x.shape
    out_dim = packed["out_dim"]
    lanes = packed["wh"].shape[1]

    # Batch tile: multiple of 8 sublanes, capped at block_b for big rollouts.
    tb = min(block_b, _round_up(max(B, 1), 8))
    padded_b = _round_up(B, tb)
    if padded_b != B:
        x = jnp.pad(x, ((0, padded_b - B), (0, 0)))
    grid = (padded_b // tb,)

    resident = lambda shape: pl.BlockSpec(shape, lambda i: (0, 0))  # weights stay in VMEM

    out = pl.pallas_call(
        _make_kernel(out_dim),
        out_shape=jax.ShapeDtypeStruct((padded_b, lanes), jnp.float32),
        grid=grid,
        in_specs=[
            pl.BlockSpec((2,), lambda i: (0,),
                         memory_space=pltpu.MemorySpace.SMEM),      # PReLU slopes
            pl.BlockSpec((tb, in_dim), lambda i: (i, 0)),           # x (batch-tiled)
            resident(packed["w1"].shape), resident(packed["b1"].shape),
            resident(packed["w2"].shape), resident(packed["b2"].shape),
            resident(packed["wh"].shape), resident(packed["bh"].shape),
        ],
        out_specs=pl.BlockSpec((tb, lanes), lambda i: (i, 0)),
        compiler_params=pltpu.CompilerParams(
            dimension_semantics=("parallel",)),
    )(packed["slopes"], x,
      packed["w1"], packed["b1"], packed["w2"], packed["b2"],
      packed["wh"], packed["bh"])

    probs = out[:B, :out_dim]
    value = out[:B, out_dim:out_dim + 1]
    return probs, value


def init_params(key, input_dim, output_dim, hidden_dim):
    """Deterministic parameter init mirroring the PyTorch module's shapes
    (weights stored transposed vs. PyTorch, i.e. (in, out))."""
    ks = jax.random.split(key, 8)

    def linear(kw, kb, fan_in, fan_out):
        bound = 1.0 / jnp.sqrt(fan_in)
        w = jax.random.uniform(kw, (fan_in, fan_out), jnp.float32, -bound, bound)
        b = jax.random.uniform(kb, (1, fan_out), jnp.float32, -bound, bound)
        return w, b

    w1, b1 = linear(ks[0], ks[1], input_dim, hidden_dim)
    w2, b2 = linear(ks[2], ks[3], hidden_dim, hidden_dim)
    wa, ba = linear(ks[4], ks[5], hidden_dim, output_dim)
    wv, bv = linear(ks[6], ks[7], hidden_dim, 1)
    return {
        "w1": w1, "b1": b1, "a1": jnp.array([0.25], jnp.float32),  # nn.PReLU default
        "w2": w2, "b2": b2, "a2": jnp.array([0.25], jnp.float32),
        "wa": wa, "ba": ba,
        "wv": wv, "bv": bv,
    }


def _reference(x, p):
    def prelu(h, a):
        return jnp.where(h >= 0, h, a * h)
    h1 = prelu(x @ p["w1"] + p["b1"], p["a1"][0])
    h2 = prelu(h1 @ p["w2"] + p["b2"], p["a2"][0])
    logits = h2 @ p["wa"] + p["ba"]
    probs = jax.nn.softmax(logits, axis=-1)
    value = h2 @ p["wv"] + p["bv"]
    return probs, value


if __name__ == "__main__":
    # LunarLander-v2: observation dim 8, 4 discrete actions.
    input_dim, output_dim, hidden_dim = 8, 4, 32
    batch = 2

    key = jax.random.PRNGKey(0)
    k_x, k_p = jax.random.split(key)
    x = jax.random.normal(k_x, (batch, input_dim), jnp.float32)
    params = init_params(k_p, input_dim, output_dim, hidden_dim)
    packed = pack_params(params)   # pad hidden to 128 lanes + fuse heads, once

    probs, value = vanilla_pg_forward(x, packed)
    jax.block_until_ready((probs, value))

    ref_probs, ref_value = _reference(x, params)
    assert probs.shape == (batch, output_dim)
    assert value.shape == (batch, 1)
    assert jnp.allclose(probs, ref_probs, atol=1e-5, rtol=1e-5)
    assert jnp.allclose(value, ref_value, atol=1e-5, rtol=1e-5)
    assert jnp.allclose(jnp.sum(probs, axis=-1), 1.0, atol=1e-5)

    # TODO(synk): torch.distributions.Categorical object itself has no Pallas
    # equivalent; we return its defining probabilities instead.
    print("KERNEL_OK")
</pallas_src>

<mosaic_0001>
module attributes {stable_mosaic.version = 11 : i64} {
  func.func @kernel(%arg0: i32, %arg1: memref<2xf32, #tpu.memory_space<smem>>, %arg2: memref<8x8xf32, #tpu.memory_space<vmem>>, %arg3: memref<8x128xf32, #tpu.memory_space<vmem>>, %arg4: memref<1x128xf32, #tpu.memory_space<vmem>>, %arg5: memref<128x128xf32, #tpu.memory_space<vmem>>, %arg6: memref<1x128xf32, #tpu.memory_space<vmem>>, %arg7: memref<128x128xf32, #tpu.memory_space<vmem>>, %arg8: memref<1x128xf32, #tpu.memory_space<vmem>>, %arg9: memref<8x128xf32, #tpu.memory_space<vmem>>) attributes {dimension_semantics = [#tpu.dimension_semantics<parallel>], iteration_bounds = array<i64: 1>, scalar_prefetch = 0 : i64, scratch_operands = 0 : i64, tpu.core_type = #tpu.core_type<tc>, window_params = [{transform_indices = @transform_0, window_bounds = array<i64: 2>}, {transform_indices = @transform_1, window_bounds = array<i64: 8, 8>}, {pipeline_mode = #tpu.pipeline_mode<synchronous>, transform_indices = @transform_2, window_bounds = array<i64: 8, 128>}, {pipeline_mode = #tpu.pipeline_mode<synchronous>, transform_indices = @transform_3, window_bounds = array<i64: 1, 128>}, {pipeline_mode = #tpu.pipeline_mode<synchronous>, transform_indices = @transform_4, window_bounds = array<i64: 128, 128>}, {pipeline_mode = #tpu.pipeline_mode<synchronous>, transform_indices = @transform_5, window_bounds = array<i64: 1, 128>}, {pipeline_mode = #tpu.pipeline_mode<synchronous>, transform_indices = @transform_6, window_bounds = array<i64: 128, 128>}, {pipeline_mode = #tpu.pipeline_mode<synchronous>, transform_indices = @transform_7, window_bounds = array<i64: 1, 128>}, {transform_indices = @transform_8, window_bounds = array<i64: 8, 128>}]} {
    %c0 = arith.constant 0 : index
    %c0_0 = arith.constant 0 : index
    %0 = vector.load %arg2[%c0, %c0_0] : memref<8x8xf32, #tpu.memory_space<vmem>>, vector<8x8xf32>
    %c0_1 = arith.constant 0 : index
    %1 = memref.load %arg1[%c0_1] : memref<2xf32, #tpu.memory_space<smem>>
    %c1 = arith.constant 1 : index
    %2 = memref.load %arg1[%c1] : memref<2xf32, #tpu.memory_space<smem>>
    %c0_2 = arith.constant 0 : index
    %c0_3 = arith.constant 0 : index
    %3 = vector.load %arg3[%c0_2, %c0_3] : memref<8x128xf32, #tpu.memory_space<vmem>>, vector<8x128xf32>
    %cst = arith.constant dense<0.000000e+00> : vector<8x128xf32>
    %4 = tpu.matmul %0, %3, %cst {dimension_numbers = #tpu.dot_dimension_numbers<[1], [0], [0], [1], [0, 0, 1, 1], [], []>} : vector<8x8xf32>, vector<8x128xf32>, vector<8x128xf32> -> vector<8x128xf32>
    %c0_4 = arith.constant 0 : index
    %c0_5 = arith.constant 0 : index
    %5 = vector.load %arg4[%c0_4, %c0_5] : memref<1x128xf32, #tpu.memory_space<vmem>>, vector<1x128xf32>
    %6 = vector.broadcast %5 : vector<1x128xf32> to vector<8x128xf32>
    %7 = arith.addf %4, %6 : vector<8x128xf32>
    %cst_6 = arith.constant 0.000000e+00 : f32
    %8 = vector.broadcast %cst_6 : f32 to vector<8x128xf32>
    %9 = arith.cmpf oge, %7, %8 : vector<8x128xf32>
    %10 = vector.broadcast %1 : f32 to vector<8x128xf32>
    %11 = arith.mulf %10, %7 : vector<8x128xf32>
    %12 = arith.select %9, %7, %11 : vector<8x128xi1>, vector<8x128xf32>
    %c0_7 = arith.constant 0 : index
    %c0_8 = arith.constant 0 : index
    %13 = vector.load %arg5[%c0_7, %c0_8] : memref<128x128xf32, #tpu.memory_space<vmem>>, vector<128x128xf32>
    %cst_9 = arith.constant dense<0.000000e+00> : vector<8x128xf32>
    %14 = tpu.matmul %12, %13, %cst_9 {dimension_numbers = #tpu.dot_dimension_numbers<[1], [0], [0], [1], [0, 0, 1, 1], [], []>} : vector<8x128xf32>, vector<128x128xf32>, vector<8x128xf32> -> vector<8x128xf32>
    %c0_10 = arith.constant 0 : index
    %c0_11 = arith.constant 0 : index
    %15 = vector.load %arg6[%c0_10, %c0_11] : memref<1x128xf32, #tpu.memory_space<vmem>>, vector<1x128xf32>
    %16 = vector.broadcast %15 : vector<1x128xf32> to vector<8x128xf32>
    %17 = arith.addf %14, %16 : vector<8x128xf32>
    %cst_12 = arith.constant 0.000000e+00 : f32
    %18 = vector.broadcast %cst_12 : f32 to vector<8x128xf32>
    %19 = arith.cmpf oge, %17, %18 : vector<8x128xf32>
    %20 = vector.broadcast %2 : f32 to vector<8x128xf32>
    %21 = arith.mulf %20, %17 : vector<8x128xf32>
    %22 = arith.select %19, %17, %21 : vector<8x128xi1>, vector<8x128xf32>
    %c0_13 = arith.constant 0 : index
    %c0_14 = arith.constant 0 : index
    %23 = vector.load %arg7[%c0_13, %c0_14] : memref<128x128xf32, #tpu.memory_space<vmem>>, vector<128x128xf32>
    %cst_15 = arith.constant dense<0.000000e+00> : vector<8x128xf32>
    %24 = tpu.matmul %22, %23, %cst_15 {dimension_numbers = #tpu.dot_dimension_numbers<[1], [0], [0], [1], [0, 0, 1, 1], [], []>} : vector<8x128xf32>, vector<128x128xf32>, vector<8x128xf32> -> vector<8x128xf32>
    %c0_16 = arith.constant 0 : index
    %c0_17 = arith.constant 0 : index
    %25 = vector.load %arg8[%c0_16, %c0_17] : memref<1x128xf32, #tpu.memory_space<vmem>>, vector<1x128xf32>
    %26 = vector.broadcast %25 : vector<1x128xf32> to vector<8x128xf32>
    %27 = arith.addf %24, %26 : vector<8x128xf32>
    %28 = tpu.iota {dimensions = array<i32: 1>} : vector<8x128xi32>
    %c4_i32 = arith.constant 4 : i32
    %29 = vector.broadcast %c4_i32 : i32 to vector<8x128xi32>
    %30 = arith.cmpi slt, %28, %29 : vector<8x128xi32>
    %cst_18 = arith.constant 0xFF800000 : f32
    %31 = vector.broadcast %cst_18 : f32 to vector<8x128xf32>
    %32 = arith.select %30, %27, %31 : vector<8x128xi1>, vector<8x128xf32>
    %cst_19 = arith.constant dense<0xFF800000> : vector<8xf32>
    %33 = vector.multi_reduction <maximumf>, %32, %cst_19 [1] : vector<8x128xf32> to vector<8xf32>
    %34 = vector.shape_cast %33 : vector<8xf32> to vector<8x1xf32>
    %35 = vector.broadcast %34 : vector<8x1xf32> to vector<8x128xf32>
    %36 = arith.subf %27, %35 : vector<8x128xf32>
    %37 = math.exp %36 : vector<8x128xf32>
    %cst_20 = arith.constant 0.000000e+00 : f32
    %38 = vector.broadcast %cst_20 : f32 to vector<8x128xf32>
    %39 = arith.select %30, %37, %38 : vector<8x128xi1>, vector<8x128xf32>
    %cst_21 = arith.constant dense<0.000000e+00> : vector<8xf32>
    %40 = vector.multi_reduction <add>, %39, %cst_21 [1] : vector<8x128xf32> to vector<8xf32>
    %41 = vector.shape_cast %40 : vector<8xf32> to vector<8x1xf32>
    %42 = tpu.reciprocal %41 : vector<8x1xf32> -> vector<8x1xf32>
    %43 = vector.broadcast %42 : vector<8x1xf32> to vector<8x128xf32>
    %44 = arith.mulf %39, %43 : vector<8x128xf32>
    %c4_i32_22 = arith.constant 4 : i32
    %45 = vector.broadcast %c4_i32_22 : i32 to vector<8x128xi32>
    %46 = arith.cmpi eq, %28, %45 : vector<8x128xi32>
    %47 = arith.select %46, %27, %44 : vector<8x128xi1>, vector<8x128xf32>
    %c0_23 = arith.constant 0 : index
    %c0_24 = arith.constant 0 : index
    %48 = vector.load %arg9[%c0_23, %c0_24] : memref<8x128xf32, #tpu.memory_space<vmem>>, vector<8x128xf32>
    tpu.vector_store %arg9[%c0_23, %c0_24], %47 {strides = array<i32>} : memref<8x128xf32, #tpu.memory_space<vmem>>, vector<8x128xf32>,
    return
  }
  func.func @transform_0(%arg0: i32) -> i32 {
    %c0_i32 = arith.constant 0 : i32
    %c0_i32_0 = arith.constant 0 : i32
    return %c0_i32 : i32
  }
  func.func @transform_1(%arg0: i32) -> (i32, i32) {
    %c0_i32 = arith.constant 0 : i32
    %c0_i32_0 = arith.constant 0 : i32
    return %arg0, %c0_i32 : i32, i32
  }
  func.func @transform_2(%arg0: i32) -> (i32, i32) {
    %c0_i32 = arith.constant 0 : i32
    %c0_i32_0 = arith.constant 0 : i32
    %c0_i32_1 = arith.constant 0 : i32
    return %c0_i32, %c0_i32_0 : i32, i32
  }
  func.func @transform_3(%arg0: i32) -> (i32, i32) {
    %c0_i32 = arith.constant 0 : i32
    %c0_i32_0 = arith.constant 0 : i32
    %c0_i32_1 = arith.constant 0 : i32
    return %c0_i32, %c0_i32_0 : i32, i32
  }
  func.func @transform_4(%arg0: i32) -> (i32, i32) {
    %c0_i32 = arith.constant 0 : i32
    %c0_i32_0 = arith.constant 0 : i32
    %c0_i32_1 = arith.constant 0 : i32
    return %c0_i32, %c0_i32_0 : i32, i32
  }
  func.func @transform_5(%arg0: i32) -> (i32, i32) {
    %c0_i32 = arith.constant 0 : i32
    %c0_i32_0 = arith.constant 0 : i32
    %c0_i32_1 = arith.constant 0 : i32
    return %c0_i32, %c0_i32_0 : i32, i32
  }
  func.func @transform_6(%arg0: i32) -> (i32, i32) {
    %c0_i32 = arith.constant 0 : i32
    %c0_i32_0 = arith.constant 0 : i32
    %c0_i32_1 = arith.constant 0 : i32
    return %c0_i32, %c0_i32_0 : i32, i32
  }
  func.func @transform_7(%arg0: i32) -> (i32, i32) {
    %c0_i32 = arith.constant 0 : i32
    %c0_i32_0 = arith.constant 0 : i32
    %c0_i32_1 = arith.constant 0 : i32
    return %c0_i32, %c0_i32_0 : i32, i32
  }
  func.func @transform_8(%arg0: i32) -> (i32, i32) {
    %c0_i32 = arith.constant 0 : i32
    %c0_i32_0 = arith.constant 0 : i32
    return %arg0, %c0_i32 : i32, i32
  }
}

</mosaic_0001>

<bundles_post_ra>
// kernel: tpu_custom_call.1
= control target key start
LH: loop header
LB: loop body
LE: loop exit
PB: predicated region body
PF: predicated region fallthrough
CT: control target
= control target key end

     0   :  { %13 = vsyncpa [#allocation5], 0  ;;  %s772_s0 = inlined_call_operand.hbm [shape: f32[2], index: 0, kind: input, shape index: {}]   ;;  %s773_s1 = inlined_call_operand.hbm [shape: f32[8,8], index: 1, kind: input, shape index: {}]   ;;  %s774_s2 = inlined_call_operand.hbm [shape: f32[8,128], index: 2, kind: input, shape index: {}]   ;;  %s775_s3 = inlined_call_operand.vmem [shape: f32[1,128], index: 3, kind: input, shape index: {}]   ;;  %s776_s4 = inlined_call_operand.hbm [shape: f32[128,128], index: 4, kind: input, shape index: {}]   ;;  %s777_s5 = inlined_call_operand.vmem [shape: f32[1,128], index: 5, kind: input, shape index: {}]   ;;  %s778_s6 = inlined_call_operand.hbm [shape: f32[128,128], index: 6, kind: input, shape index: {}]   ;;  %s779_s7 = inlined_call_operand.vmem [shape: f32[1,128], index: 7, kind: input, shape index: {}]   ;;  %s780_s8 = inlined_call_operand.hbm [shape: f32[8,128], index: 8, kind: output, shape index: {}]  }
   0x1   :  { %14 = vsyncpa [#allocation3], 0 }
   0x2   :  { %15 = vsyncpa [#allocation8], 0 }
   0x3   :  { %16 = vsyncpa [#allocation11], 0 }
   0x4   :  { %17 = vsyncpa [#allocation4], 0  ;;  %s654_s27 = smov [#allocation7]   ;;  %s655_s29 = smov [#allocation6]  }
   0x5   :  { %s42_s28 = sshll.u32 %s654_s27, 4  ;;  %s32_s30 = sshll.u32 %s655_s29, 4  ;;  %s43_s28 = int_to_ptr.vmem [resolvable:$true] %s42_s28  ;;  %s33_s30 = int_to_ptr.vmem [resolvable:$true] %s32_s30 }
   0x6   :  { %s544_s9 = scalar_lea.vmem %s43_s28, 128  ;;  %p549_p1 = scmp.lt.s32.totalorder %s43_s28, %s43_s28 }
   0x7   :  { %p545_p0 = scmp.ne.s32.totalorder %s43_s28, %s544_s9  ;;  %p550_p2 = scmp.lt.s32.totalorder %s544_s9, %s544_s9 }
   0x9   :  { %p551_p3 = por %p550_p2, %p549_p1 }
   0xb   :  { %p552_p4 = pnand %p551_p3, %p545_p0 }
   0xd   :  { %555 = shalt.err (!%p552_p4)
}
   0xe   :  { %45 = dma.hbm_to_vmem [thread:$0]  %s774_s2, 128, %s43_s28, [#allocation8]  }
   0xf   :  { %s656_s12 = smov [#allocation2]   ;;  %s572_s15 = scalar_lea.vmem %s33_s30, 128 }
  0x10   :  { %25 = dma.hbm_to_smem %s772_s0, 16, %s656_s12, [#allocation5]  }
  0x11   :  { %p573_p5 = scmp.ne.s32.totalorder %s33_s30, %s572_s15  ;;  %p577_p6 = scmp.lt.s32.totalorder %s33_s30, %s33_s30 }
  0x12   :  { %p578_p7 = scmp.lt.s32.totalorder %s572_s15, %s572_s15 }
  0x14   :  { %p579_p8 = por %p578_p7, %p577_p6 }
  0x16   :  { %p580_p9 = pnand %p579_p8, %p573_p5 }
  0x18   :  { %583 = shalt.err (!%p580_p9)
}
  0x19   :  { %35 = dma.hbm_to_vmem [thread:$0]  %s773_s1, 128, %s33_s30, [#allocation3]  }
  0x1a   :  { %s657_s18 = smov [#allocation9]  }
  0x1b   :  { %s53_s19 = sshll.u32 %s657_s18, 4  ;;  %s54_s19 = int_to_ptr.vmem [resolvable:$true] %s53_s19 }
  0x1c   :  { %s592_s2 = scalar_lea.vmem %s54_s19, 2048  ;;  %p597_p11 = scmp.lt.s32.totalorder %s54_s19, %s54_s19 }
  0x1d   :  { %p593_p10 = scmp.ne.s32.totalorder %s54_s19, %s592_s2  ;;  %p598_p12 = scmp.lt.s32.totalorder %s592_s2, %s592_s2 }
  0x1f   :  { %p599_p13 = por %p598_p12, %p597_p11 }
  0x21   :  { %p600_p0 = pnand %p599_p13, %p593_p10 }
  0x23   :  { %603 = shalt.err (!%p600_p0)
}
  0x24   :  { %s658_s0 = smov 128   ;;  %s659_s20 = smov 8  }
  0x25   :  { %59 = dma.hbm_to_vmem [thread:$0]  %s776_s4, 2048, %s54_s19, [#allocation8], %s658_s0, %s658_s0, %s659_s20  }
  0x26   :  { %s660_s23 = smov [#allocation10]  }
  0x27   :  { %s67_s24 = sshll.u32 %s660_s23, 4  ;;  %s68_s24 = int_to_ptr.vmem [resolvable:$true] %s67_s24 }
  0x28   :  { %s612_s1 = scalar_lea.vmem %s68_s24, 2048  ;;  %p617_p2 = scmp.lt.s32.totalorder %s68_s24, %s68_s24 }
  0x29   :  { %p613_p1 = scmp.ne.s32.totalorder %s68_s24, %s612_s1  ;;  %p618_p3 = scmp.lt.s32.totalorder %s612_s1, %s612_s1 }
  0x2b   :  { %p619_p4 = por %p618_p3, %p617_p2 }
  0x2d   :  { %p620_p5 = pnand %p619_p4, %p613_p1 }
  0x2f   :  { %623 = shalt.err (!%p620_p5)
}
  0x30   :  { %73 = dma.hbm_to_vmem [thread:$0]  %s778_s6, 2048, %s68_s24, [#allocation11], %s658_s0, %s658_s0, %s659_s20  }
  0x31   :  { %644 = dma.done.wait [#allocation5], 16  }
  0x32   :  { %645 = vsyncadd [#allocation5], 4294967280 }
  0x33   :  { %646 = dma.done.wait [#allocation3], 128  }
  0x34   :  { %647 = vsyncadd [#allocation3], 4294967168 }
  0x35   :  { %648 = dma.done.wait [#allocation8], 2176  }
  0x36   :  { %649 = vsyncadd [#allocation8], 4294965120 }
  0x37   :  { %650 = dma.done.wait [#allocation11], 2048  }
  0x38   :  { %651 = vsyncadd [#allocation11], 4294965248 }
  0x39   :  { %91 = sfence }
  0x3a   :  { %v95_v0 = vld [vmem:[#allocation7] sm:$0xff]  ;;  %v92_v1 = vld [vmem:[#allocation6] sm:$0xff]  ;;  %vm103_vm0 = vcmask 64512   ;;  %v661_v3 = vmov 0.0   ;;  %vm662_vm1 = vmmov 0   ;;  %v194_v5 = vld [vmem:[#allocation9 + $0x68] sm:$0xff]  ;;  %v371_v49 = vlaneseq }
  0x3b   :  { %v196_v2 = vld [vmem:[#allocation9 + $0x78] sm:$0xff]  ;;  %447 = vmatprep.subr.mxu0 %v661_v3  ;;  %449 = vmatprep.mubr.msk.f32.mxu0 %vm662_vm1, %v661_v3  ;;  %v195_v4 = vld [vmem:[#allocation9 + $0x70] sm:$0xff]  ;;  %v193_v6 = vld [vmem:[#allocation9 + $0x60] sm:$0xff]  ;;  %s93_s4 = sld [smem:[#allocation2]] }
  0x3c   :  { %448 = vmatpush3.msra.mxu0 %v95_v0  ;;  %452 = vmatprep.subr.mxu1 %v661_v3  ;;  %v192_v7 = vld [vmem:[#allocation9 + $0x58] sm:$0xff]  ;;  %v191_v8 = vld [vmem:[#allocation9 + $0x50] sm:$0xff]  ;;  %v190_v9 = vld [vmem:[#allocation9 + $0x48] sm:$0xff]  ;;  %s406_s28 = sld [smem:[#allocation2 + $0x1]]  ;;  %v372_v50 = vand.u32 127, %v371_v49 }
  0x3d   :  { %450 = vmatmul.mubr.msk.f32.vlgmr.msra.gmra.mxu0 %vm103_vm0, %v92_v1  ;;  %453 = vmatpush3.msra.mxu1 %v196_v2  ;;  %v189_v10 = vld [vmem:[#allocation9 + $0x40] sm:$0xff]  ;;  %v188_v11 = vld [vmem:[#allocation9 + $0x38] sm:$0xff]  ;;  %v187_v12 = vld [vmem:[#allocation9 + $0x30] sm:$0xff] }
  0x3e   :  { %454 = vmatprep.subr.mxu1 %v661_v3  ;;  %484 = vmatprep.mubr.msk.f32.mxu1 %vm662_vm1, %v661_v3  ;;  %v186_v13 = vld [vmem:[#allocation9 + $0x28] sm:$0xff]  ;;  %v185_v14 = vld [vmem:[#allocation9 + $0x20] sm:$0xff]  ;;  %v184_v15 = vld [vmem:[#allocation9 + $0x18] sm:$0xff]  ;;  %vm373_vm4 = vcmp.lt.s32.totalorder %v372_v50, 4  ;;  %vm385_vm5 = vcmp.eq.s32.totalorder %v372_v50, 4 }
  0x3f   :  { %455 = vmatpush3.msra.mxu1 %v195_v4  ;;  %487 = vmatprep.subr.mxu0 %v661_v3  ;;  %v183_v16 = vld [vmem:[#allocation9 + $0x10] sm:$0xff]  ;;  %v182_v17 = vld [vmem:[#allocation9 + $0x8] sm:$0xff]  ;;  %v181_v18 = vld [vmem:[#allocation9] sm:$0xff] }
  0x40   :  { %456 = vmatprep.subr.mxu1 %v661_v3  ;;  %519 = vmatprep.mubr.msk.f32.mxu0 %vm662_vm1, %v661_v3  ;;  %v293_v19 = vld [vmem:[#allocation10 + $0x78] sm:$0xff]  ;;  %v292_v20 = vld [vmem:[#allocation10 + $0x70] sm:$0xff]  ;;  %v291_v21 = vld [vmem:[#allocation10 + $0x68] sm:$0xff] }
  0x41   :  { %457 = vmatpush3.msra.mxu1 %v194_v5  ;;  %488 = vmatpush3.msra.mxu0 %v293_v19  ;;  %v290_v22 = vld [vmem:[#allocation10 + $0x60] sm:$0xff]  ;;  %v289_v23 = vld [vmem:[#allocation10 + $0x58] sm:$0xff]  ;;  %v288_v24 = vld [vmem:[#allocation10 + $0x50] sm:$0xff]  ;;  %v178_v34 = vstv %s93_s4 }
  0x42   :  { %458 = vmatprep.subr.mxu1 %v661_v3  ;;  %489 = vmatprep.subr.mxu0 %v661_v3  ;;  %v287_v25 = vld [vmem:[#allocation10 + $0x48] sm:$0xff]  ;;  %v286_v26 = vld [vmem:[#allocation10 + $0x40] sm:$0xff]  ;;  %v285_v27 = vld [vmem:[#allocation10 + $0x38] sm:$0xff]  ;;  %v275_v44 = vstv %s406_s28 }
  0x43   :  { %459 = vmatpush3.msra.mxu1 %v193_v6  ;;  %490 = vmatpush3.msra.mxu0 %v292_v20  ;;  %v284_v28 = vld [vmem:[#allocation10 + $0x30] sm:$0xff]  ;;  %v283_v29 = vld [vmem:[#allocation10 + $0x28] sm:$0xff]  ;;  %v282_v30 = vld [vmem:[#allocation10 + $0x20] sm:$0xff] }
  0x44   :  { %460 = vmatprep.subr.mxu1 %v661_v3  ;;  %491 = vmatprep.subr.mxu0 %v661_v3  ;;  %v281_v31 = vld [vmem:[#allocation10 + $0x18] sm:$0xff]  ;;  %v407_v32 = vld [vmem:[%s775_s3] ss:$0 sm:$0xff]  ;;  %v279_v40 = vld [vmem:[#allocation10 + $0x8] sm:$0xff] }
  0x45   :  { %461 = vmatpush3.msra.mxu1 %v192_v7  ;;  %492 = vmatpush3.msra.mxu0 %v291_v21  ;;  %v280_v39 = vld [vmem:[#allocation10 + $0x10] sm:$0xff]  ;;  %v278_v41 = vld [vmem:[#allocation10] sm:$0xff] }
  0x46   :  { %462 = vmatprep.subr.mxu1 %v661_v3  ;;  %493 = vmatprep.subr.mxu0 %v661_v3  ;;  %v409_v42 = vld [vmem:[%s777_s5] ss:$0 sm:$0xff]  ;;  %s663_s5 = smov [#allocation12]  }
  0x47   :  { %463 = vmatpush3.msra.mxu1 %v191_v8  ;;  %494 = vmatpush3.msra.mxu0 %v290_v22  ;;  %v410_v51 = vld [vmem:[%s779_s7] ss:$0 sm:$0xff]  ;;  %s394_s10 = sshll.u32 %s663_s5, 4  ;;  %s395_s10 = int_to_ptr.vmem [resolvable:$true] %s394_s10 }
  0x48   :  { %464 = vmatprep.subr.mxu1 %v661_v3  ;;  %495 = vmatprep.subr.mxu0 %v661_v3  ;;  %s624_s7 = scalar_lea.vmem %s395_s10, 128  ;;  %p629_p7 = scmp.lt.s32.totalorder %s395_s10, %s395_s10 }
  0x49   :  { %465 = vmatpush3.msra.mxu1 %v190_v9  ;;  %496 = vmatpush3.msra.mxu0 %v289_v23  ;;  %p625_p6 = scmp.ne.s32.totalorder %s395_s10, %s624_s7  ;;  %p630_p8 = scmp.lt.s32.totalorder %s624_s7, %s624_s7 }
  0x4a   :  { %466 = vmatprep.subr.mxu1 %v661_v3  ;;  %497 = vmatprep.subr.mxu0 %v661_v3 }
  0x4b   :  { %467 = vmatpush3.msra.mxu1 %v189_v10  ;;  %498 = vmatpush3.msra.mxu0 %v288_v24  ;;  %p631_p9 = por %p630_p8, %p629_p7 }
  0x4c   :  { %468 = vmatprep.subr.mxu1 %v661_v3  ;;  %499 = vmatprep.subr.mxu0 %v661_v3 }
  0x4d   :  { %469 = vmatpush3.msra.mxu1 %v188_v11  ;;  %500 = vmatpush3.msra.mxu0 %v287_v25  ;;  %p632_p10 = pnand %p631_p9, %p625_p6 }
  0x4e   :  { %470 = vmatprep.subr.mxu1 %v661_v3  ;;  %501 = vmatprep.subr.mxu0 %v661_v3 }
  0x4f   :  { %471 = vmatpush3.msra.mxu1 %v187_v12  ;;  %502 = vmatpush3.msra.mxu0 %v286_v26 }
  0x50   :  { %472 = vmatprep.subr.mxu1 %v661_v3  ;;  %503 = vmatprep.subr.mxu0 %v661_v3 }
  0x51   :  { %473 = vmatpush3.msra.mxu1 %v186_v13  ;;  %504 = vmatpush3.msra.mxu0 %v285_v27 }
  0x52   :  { %474 = vmatprep.subr.mxu1 %v661_v3  ;;  %505 = vmatprep.subr.mxu0 %v661_v3 }
  0x53   :  { %475 = vmatpush3.msra.mxu1 %v185_v14  ;;  %506 = vmatpush3.msra.mxu0 %v284_v28 }
  0x54   :  { %476 = vmatprep.subr.mxu1 %v661_v3  ;;  %507 = vmatprep.subr.mxu0 %v661_v3 }
  0x55   :  { %477 = vmatpush3.msra.mxu1 %v184_v15  ;;  %508 = vmatpush3.msra.mxu0 %v283_v29 }
  0x56   :  { %478 = vmatprep.subr.mxu1 %v661_v3  ;;  %509 = vmatprep.subr.mxu0 %v661_v3 }
  0x57   :  { %479 = vmatpush3.msra.mxu1 %v183_v16  ;;  %510 = vmatpush3.msra.mxu0 %v282_v30 }
  0x58   :  { %480 = vmatprep.subr.mxu1 %v661_v3  ;;  %511 = vmatprep.subr.mxu0 %v661_v3 }
  0x59   :  { %481 = vmatpush3.msra.mxu1 %v182_v17  ;;  %512 = vmatpush3.msra.mxu0 %v281_v31 }
  0x5a   :  { %482 = vmatprep.subr.mxu1 %v661_v3  ;;  %513 = vmatprep.subr.mxu0 %v661_v3 }
  0x5b   :  { %483 = vmatpush3.msra.mxu1 %v181_v18  ;;  %514 = vmatpush3.msra.mxu0 %v280_v39 }
  0x5c   :  { %515 = vmatprep.subr.mxu0 %v661_v3 }
  0x5d   :  { %516 = vmatpush3.msra.mxu0 %v279_v40 }
  0x5e   :  { %517 = vmatprep.subr.mxu0 %v661_v3 }
  0x5f   :  { %518 = vmatpush3.msra.mxu0 %v278_v41 }
  0xfd   :  { %v173_v33 = vpop.f32.mrf.mxu0 }
  0xfe   :  { %v174_v35 = vadd.f32 %v407_v32, %v173_v33 }
  0xff   :  { %v451_v36 = vpop.f32.mrf.mxu0 }
 0x100   :  { %v179_v37 = vmul.f32 %v178_v34, %v174_v35  ;;  %vm177_vm2 = vcmp.ge.f32.partialorder %v174_v35, 0.0 }
 0x102   :  { %v180_v38 = vsel %vm177_vm2, %v174_v35, %v179_v37 }
 0x103   :  { %485 = vmatmul.mubr.f32.vlgmr.msra.gmra.mxu1 %v180_v38 }
 0x1c3   :  { %v270_v43 = vpop.f32.mrf.mxu1 }
 0x1c4   :  { %v271_v45 = vadd.f32 %v409_v42, %v270_v43 }
 0x1c5   :  { %v486_v46 = vpop.f32.mrf.mxu1 }
 0x1c6   :  { %vm274_vm3 = vcmp.ge.f32.partialorder %v271_v45, 0.0  ;;  %v276_v47 = vmul.f32 %v275_v44, %v271_v45 }
 0x1c8   :  { %v277_v48 = vsel %vm274_vm3, %v271_v45, %v276_v47 }
 0x1c9   :  { %520 = vmatmul.mubr.f32.vlgmr.msra.gmra.mxu0 %v277_v48 }
 0x289   :  { %v367_v52 = vpop.f32.mrf.mxu0 }
 0x28a   :  { %v368_v53 = vadd.f32 %v410_v51, %v367_v52 }
 0x28b   :  { %v521_v54 = vpop.f32.mrf.mxu0 }
 0x28c   :  { %v374_v55 = vsel %vm373_vm4, %v368_v53, -inf }
 0x28d   :  { %375 = vmax.xlane.f32.xlu0 %v374_v55 }
 0x316   :  { %v376_v56 = vpop.xlane.xlu0 %375 }
 0x317   :  { %v377_v57 = vsub.f32 %v368_v53, %v376_v56 }
 0x319   :  { %v378_v58 = vmul.f32 1.442695, %v377_v57 }
 0x31b   :  { %532 = vpow2.f32 %v378_v58 }
 0x328   :  { %v533_v59 = vpop.eup %532 }
 0x329   :  { %v380_v60 = vsel %vm373_vm4, %v533_v59, 0.0 }
 0x32a   :  { %381 = vadd.xlane.f32.xlu0 %v380_v60 }
 0x3b3   :  { %v382_v61 = vpop.xlane.xlu0 %381 }
 0x3b4   :  { %534 = vrcp.f32 %v382_v61 }
 0x3c1   :  { %v535_v62 = vpop.eup %534 }
 0x3c2   :  { %v384_v63 = vmul.f32 %v535_v62, %v380_v60 }
 0x3c4   :  { %v386_v0 = vsel %vm385_vm5, %v368_v53, %v384_v63 }
 0x3c5   :  { %387 = vst [vmem:[#allocation12] sm:$0xff] %v386_v0 }
 0x3c6   :  { %635 = shalt.err (!%p632_p10)
}
 0x3c7   :  { %397 = dma.vmem_to_hbm [thread:$0]  %s395_s10, 128, %s780_s8, [#allocation4]  }
 0x3c8   :  { %652 = dma.done.wait [#allocation4], 128  }
 0x3c9   :  { %653 = vsyncadd [#allocation4], 4294967168 }
 0x3ca   :  { %401 = vsyncpa [#allocation3], 1 }
 0x3cb   :  { %402 = vsyncpa [#allocation8], 1 }
 0x3cc   :  { %403 = vsyncpa [#allocation11], 1 }
 0x3cd   :  { %404 = vsyncpa [#allocation4], 1 }
 0x3ce   :  { %405 = vsyncpa [#allocation5], 1 }

</bundles_post_ra>
